<compile_context>
chip_gen: v6e
topology: v6e:2x2x1
jax: 0.10.0
libtpu: 0.0.40
codegen_flags: <defaults>
</compile_context>

<pallas_src>
import functools
import math

import jax
import jax.numpy as jnp
from jax import lax
from jax.experimental import pallas as pl
from jax.experimental.pallas import tpu as pltpu


def bf_kernel(x_ref, w_in_ref, w2_ref, wh_ref, b_ref, out_ref, *, hidden, act):
    H, A = hidden, act
    x = x_ref[...]                      # (TM, S+2)
    b = b_ref[...]                      # (1, 2H + H + 2A)

    # --- fused fc1 + commands: one block-diagonal matmul, one sigmoid pass ---
    z = jnp.dot(x, w_in_ref[...], preferred_element_type=jnp.float32)
    z = jax.nn.sigmoid(z + b[:, : 2 * H])          # (TM, 2H)
    h = z[:, :H] * z[:, H: 2 * H]                  # sigmoid(fc1) * sigmoid(cmd)

    # --- fc2 + tanh ---
    h2 = jnp.tanh(
        jnp.dot(h, w2_ref[...], preferred_element_type=jnp.float32)
        + b[:, 2 * H: 3 * H])                      # (TM, H)

    # --- fused mean/var head: one matmul, one (TM, 2A) output ---
    head = (jnp.dot(h2, wh_ref[...], preferred_element_type=jnp.float32)
            + b[:, 3 * H: 3 * H + 2 * A])          # (TM, 2A)
    col = lax.broadcasted_iota(jnp.int32, head.shape, 1)
    out_ref[...] = jnp.where(col < A,
                             jnp.tanh(head),
                             jnp.sqrt(jax.nn.softplus(head)))


def _pick_block_m(B):
    for tm in (1024, 512, 256, 128, 64, 32, 16, 8):
        if B % tm == 0:
            return tm
    return B  # tiny / odd batch: single full-extent block


def bf_forward(state, command, packed):
    """state: (B, S) f32, command: (B, 2) f32 -> (mu (B, A), sig (B, A))."""
    B = state.shape[0]
    w_in, w2, wh, b_all = (packed["w_in"], packed["w2"],
                           packed["w_head"], packed["b_all"])
    S2 = w_in.shape[0]
    H = w2.shape[0]
    A = wh.shape[1] // 2

    x = jnp.concatenate([state, command], axis=-1).astype(jnp.float32)

    tm = _pick_block_m(B)
    grid = (B // tm,)

    kernel = functools.partial(bf_kernel, hidden=H, act=A)
    out = pl.pallas_call(
        kernel,
        out_shape=jax.ShapeDtypeStruct((B, 2 * A), jnp.float32),
        grid=grid,
        in_specs=[
            pl.BlockSpec((tm, S2), lambda i: (i, 0)),          # activations
            pl.BlockSpec((S2, 2 * H), lambda i: (0, 0)),       # resident weights
            pl.BlockSpec((H, H), lambda i: (0, 0)),
            pl.BlockSpec((H, 2 * A), lambda i: (0, 0)),
            pl.BlockSpec((1, 3 * H + 2 * A), lambda i: (0, 0)),
        ],
        out_specs=pl.BlockSpec((tm, 2 * A), lambda i: (i, 0)),
        compiler_params=pltpu.CompilerParams(
            dimension_semantics=("parallel",)),
    )(x, w_in, w2, wh, b_all)

    return out[:, :A], out[:, A:]


def init_bf_params(key, state_space, action_space, hidden_size, init_w=0.003):
    """Deterministic init mirroring BF.reset_parameters / torch defaults."""
    ks = jax.random.split(key, 10)

    def unif(k, shape, lim):
        return jax.random.uniform(k, shape, jnp.float32, -lim, lim)

    lim_h = 1.0 / math.sqrt(hidden_size)      # hidden_init uses weight.size()[0]
    params = {
        "w1": unif(ks[0], (state_space, hidden_size), lim_h),
        "b1": unif(ks[1], (1, hidden_size), 1.0 / math.sqrt(state_space)),
        "wc": unif(ks[2], (2, hidden_size), lim_h),
        "bc": unif(ks[3], (1, hidden_size), 1.0 / math.sqrt(2.0)),
        "w2": unif(ks[4], (hidden_size, hidden_size), lim_h),
        "b2": unif(ks[5], (1, hidden_size), 1.0 / math.sqrt(hidden_size)),
        "wm": unif(ks[6], (hidden_size, action_space), init_w),
        "bm": unif(ks[7], (1, action_space), 1.0 / math.sqrt(hidden_size)),
        "wv": unif(ks[8], (hidden_size, action_space), init_w),
        "bv": unif(ks[9], (1, action_space), 1.0 / math.sqrt(hidden_size)),
    }
    return params


def pack_bf_params(p):
    """Fuse layer params into the kernel's packed layout (done once)."""
    S, H = p["w1"].shape
    C = p["wc"].shape[0]          # 2
    A = p["wm"].shape[1]
    # Block-diagonal [[w1, 0], [0, wc]] : (S+C, 2H)
    w_in = jnp.zeros((S + C, 2 * H), jnp.float32)
    w_in = w_in.at[:S, :H].set(p["w1"])
    w_in = w_in.at[S:, H:].set(p["wc"])
    # Fused mean/var head: (H, 2A)
    w_head = jnp.concatenate([p["wm"], p["wv"]], axis=1)
    # All biases in one row: (1, 2H + H + 2A)
    b_all = jnp.concatenate(
        [p["b1"], p["bc"], p["b2"], p["bm"], p["bv"]], axis=1)
    return {"w_in": w_in, "w2": p["w2"], "w_head": w_head, "b_all": b_all}


def bf_forward_ref(state, command, p):
    """Pure-JAX reference of BF.forward for correctness checking."""
    h1 = jax.nn.sigmoid(state @ p["w1"] + p["b1"])
    hc = jax.nn.sigmoid(command @ p["wc"] + p["bc"])
    h = h1 * hc
    h2 = jnp.tanh(h @ p["w2"] + p["b2"])
    mu = jnp.tanh(h2 @ p["wm"] + p["bm"])
    sig = jnp.sqrt(jax.nn.softplus(h2 @ p["wv"] + p["bv"]))
    return mu, sig


if __name__ == "__main__":
    # CartPoleContinuous-v0: obs dim 4, action dim 1.
    B, STATE, ACTION, HIDDEN = 8, 4, 1, 32
    RETURN_SCALE, HORIZON_SCALE = 0.02, 0.02

    key = jax.random.PRNGKey(0)
    k_params, k_state, k_desire, k_horizon = jax.random.split(key, 4)

    params = init_bf_params(k_params, STATE, ACTION, HIDDEN, init_w=0.003)
    packed = pack_bf_params(params)

    state = jax.random.normal(k_state, (B, STATE), jnp.float32)
    desire = jax.random.normal(k_desire, (B, 1), jnp.float32) * 10.0
    horizon = jax.random.uniform(k_horizon, (B, 1), jnp.float32, 1.0, 100.0)
    # command = cat(desire * return_scale, horizon * horizon_scale, dim=-1)
    command = jnp.concatenate(
        [desire * RETURN_SCALE, horizon * HORIZON_SCALE], axis=-1)

    mu, sig = bf_forward(state, command, packed)
    jax.block_until_ready((mu, sig))

    mu_ref, sig_ref = bf_forward_ref(state, command, params)
    assert mu.shape == (B, ACTION) and sig.shape == (B, ACTION)
    assert jnp.allclose(mu, mu_ref, atol=1e-5, rtol=1e-5)
    assert jnp.allclose(sig, sig_ref, atol=1e-5, rtol=1e-5)

    print("KERNEL_OK")
</pallas_src>

<mosaic_0001>
module attributes {stable_mosaic.version = 11 : i64} {
  func.func @bf_kernel(%arg0: i32, %arg1: memref<8x6xf32, #tpu.memory_space<vmem>>, %arg2: memref<6x64xf32, #tpu.memory_space<vmem>>, %arg3: memref<32x32xf32, #tpu.memory_space<vmem>>, %arg4: memref<32x2xf32, #tpu.memory_space<vmem>>, %arg5: memref<1x98xf32, #tpu.memory_space<vmem>>, %arg6: memref<8x2xf32, #tpu.memory_space<vmem>>) attributes {dimension_semantics = [#tpu.dimension_semantics<parallel>], iteration_bounds = array<i64: 1>, scalar_prefetch = 0 : i64, scratch_operands = 0 : i64, tpu.core_type = #tpu.core_type<tc>, window_params = [{transform_indices = @transform_0, window_bounds = array<i64: 8, 6>}, {pipeline_mode = #tpu.pipeline_mode<synchronous>, transform_indices = @transform_1, window_bounds = array<i64: 6, 64>}, {pipeline_mode = #tpu.pipeline_mode<synchronous>, transform_indices = @transform_2, window_bounds = array<i64: 32, 32>}, {pipeline_mode = #tpu.pipeline_mode<synchronous>, transform_indices = @transform_3, window_bounds = array<i64: 32, 2>}, {pipeline_mode = #tpu.pipeline_mode<synchronous>, transform_indices = @transform_4, window_bounds = array<i64: 1, 98>}, {transform_indices = @transform_5, window_bounds = array<i64: 8, 2>}]} {
    %c0 = arith.constant 0 : index
    %c0_0 = arith.constant 0 : index
    %0 = vector.load %arg1[%c0, %c0_0] : memref<8x6xf32, #tpu.memory_space<vmem>>, vector<8x6xf32>
    %c0_1 = arith.constant 0 : index
    %c0_2 = arith.constant 0 : index
    %1 = vector.load %arg5[%c0_1, %c0_2] : memref<1x98xf32, #tpu.memory_space<vmem>>, vector<1x98xf32>
    %c0_3 = arith.constant 0 : index
    %c0_4 = arith.constant 0 : index
    %2 = vector.load %arg2[%c0_3, %c0_4] : memref<6x64xf32, #tpu.memory_space<vmem>>, vector<6x64xf32>
    %cst = arith.constant dense<0.000000e+00> : vector<8x64xf32>
    %3 = tpu.matmul %0, %2, %cst {dimension_numbers = #tpu.dot_dimension_numbers<[1], [0], [0], [1], [0, 0, 1, 1], [], []>} : vector<8x6xf32>, vector<6x64xf32>, vector<8x64xf32> -> vector<8x64xf32>
    %4 = vector.extract_strided_slice %1 {offsets = [0, 0], sizes = [1, 64], strides = [1, 1]} : vector<1x98xf32> to vector<1x64xf32>
    %5 = vector.broadcast %4 : vector<1x64xf32> to vector<8x64xf32>
    %6 = arith.addf %3, %5 : vector<8x64xf32>
    %7 = arith.negf %6 : vector<8x64xf32>
    %8 = math.exp %7 : vector<8x64xf32>
    %cst_5 = arith.constant 1.000000e+00 : f32
    %9 = vector.broadcast %cst_5 : f32 to vector<8x64xf32>
    %10 = arith.addf %9, %8 : vector<8x64xf32>
    %11 = arith.divf %9, %10 : vector<8x64xf32>
    %12 = vector.extract_strided_slice %11 {offsets = [0, 0], sizes = [8, 32], strides = [1, 1]} : vector<8x64xf32> to vector<8x32xf32>
    %13 = vector.extract_strided_slice %11 {offsets = [0, 32], sizes = [8, 32], strides = [1, 1]} : vector<8x64xf32> to vector<8x32xf32>
    %14 = arith.mulf %12, %13 : vector<8x32xf32>
    %c0_6 = arith.constant 0 : index
    %c0_7 = arith.constant 0 : index
    %15 = vector.load %arg3[%c0_6, %c0_7] : memref<32x32xf32, #tpu.memory_space<vmem>>, vector<32x32xf32>
    %cst_8 = arith.constant dense<0.000000e+00> : vector<8x32xf32>
    %16 = tpu.matmul %14, %15, %cst_8 {dimension_numbers = #tpu.dot_dimension_numbers<[1], [0], [0], [1], [0, 0, 1, 1], [], []>} : vector<8x32xf32>, vector<32x32xf32>, vector<8x32xf32> -> vector<8x32xf32>
    %17 = vector.extract_strided_slice %1 {offsets = [0, 64], sizes = [1, 32], strides = [1, 1]} : vector<1x98xf32> to vector<1x32xf32>
    %18 = vector.broadcast %17 : vector<1x32xf32> to vector<8x32xf32>
    %19 = arith.addf %16, %18 : vector<8x32xf32>
    %20 = math.tanh %19 : vector<8x32xf32>
    %c0_9 = arith.constant 0 : index
    %c0_10 = arith.constant 0 : index
    %21 = vector.load %arg4[%c0_9, %c0_10] : memref<32x2xf32, #tpu.memory_space<vmem>>, vector<32x2xf32>
    %cst_11 = arith.constant dense<0.000000e+00> : vector<8x2xf32>
    %22 = tpu.matmul %20, %21, %cst_11 {dimension_numbers = #tpu.dot_dimension_numbers<[1], [0], [0], [1], [0, 0, 1, 1], [], []>} : vector<8x32xf32>, vector<32x2xf32>, vector<8x2xf32> -> vector<8x2xf32>
    %23 = vector.extract_strided_slice %1 {offsets = [0, 96], sizes = [1, 2], strides = [1, 1]} : vector<1x98xf32> to vector<1x2xf32>
    %24 = vector.broadcast %23 : vector<1x2xf32> to vector<8x2xf32>
    %25 = arith.addf %22, %24 : vector<8x2xf32>
    %26 = tpu.iota {dimensions = array<i32: 1>} : vector<8x2xi32>
    %c1_i32 = arith.constant 1 : i32
    %27 = vector.broadcast %c1_i32 : i32 to vector<8x2xi32>
    %28 = arith.cmpi slt, %26, %27 : vector<8x2xi32>
    %29 = math.tanh %25 : vector<8x2xf32>
    %cst_12 = arith.constant 0.000000e+00 : f32
    %30 = vector.broadcast %cst_12 : f32 to vector<8x2xf32>
    %31 = arith.maximumf %25, %30 : vector<8x2xf32>
    %32 = vector.broadcast %cst_12 : f32 to vector<8x2xf32>
    %33 = arith.subf %25, %32 : vector<8x2xf32>
    %34 = arith.cmpf one, %33, %33 : vector<8x2xf32>
    %35 = vector.broadcast %cst_12 : f32 to vector<8x2xf32>
    %36 = arith.addf %25, %35 : vector<8x2xf32>
    %37 = math.absf %33 : vector<8x2xf32>
    %cst_13 = arith.constant 0.000000e+00 : f32
    %38 = vector.broadcast %cst_13 : f32 to vector<8x2xf32>
    %39 = arith.subf %38, %37 : vector<8x2xf32>
    %40 = math.exp %39 : vector<8x2xf32>
    %41 = math.log1p %40 : vector<8x2xf32>
    %42 = arith.addf %31, %41 : vector<8x2xf32>
    %43 = arith.select %34, %36, %42 : vector<8x2xi1>, vector<8x2xf32>
    %44 = math.sqrt %43 : vector<8x2xf32>
    %45 = arith.select %28, %29, %44 : vector<8x2xi1>, vector<8x2xf32>
    %c0_14 = arith.constant 0 : index
    %c0_15 = arith.constant 0 : index
    %46 = vector.load %arg6[%c0_14, %c0_15] : memref<8x2xf32, #tpu.memory_space<vmem>>, vector<8x2xf32>
    tpu.vector_store %arg6[%c0_14, %c0_15], %45 {strides = array<i32>} : memref<8x2xf32, #tpu.memory_space<vmem>>, vector<8x2xf32>,
    return
  }
  func.func @transform_0(%arg0: i32) -> (i32, i32) {
    %c0_i32 = arith.constant 0 : i32
    %c0_i32_0 = arith.constant 0 : i32
    return %arg0, %c0_i32 : i32, i32
  }
  func.func @transform_1(%arg0: i32) -> (i32, i32) {
    %c0_i32 = arith.constant 0 : i32
    %c0_i32_0 = arith.constant 0 : i32
    %c0_i32_1 = arith.constant 0 : i32
    return %c0_i32, %c0_i32_0 : i32, i32
  }
  func.func @transform_2(%arg0: i32) -> (i32, i32) {
    %c0_i32 = arith.constant 0 : i32
    %c0_i32_0 = arith.constant 0 : i32
    %c0_i32_1 = arith.constant 0 : i32
    return %c0_i32, %c0_i32_0 : i32, i32
  }
  func.func @transform_3(%arg0: i32) -> (i32, i32) {
    %c0_i32 = arith.constant 0 : i32
    %c0_i32_0 = arith.constant 0 : i32
    %c0_i32_1 = arith.constant 0 : i32
    return %c0_i32, %c0_i32_0 : i32, i32
  }
  func.func @transform_4(%arg0: i32) -> (i32, i32) {
    %c0_i32 = arith.constant 0 : i32
    %c0_i32_0 = arith.constant 0 : i32
    %c0_i32_1 = arith.constant 0 : i32
    return %c0_i32, %c0_i32_0 : i32, i32
  }
  func.func @transform_5(%arg0: i32) -> (i32, i32) {
    %c0_i32 = arith.constant 0 : i32
    %c0_i32_0 = arith.constant 0 : i32
    return %arg0, %c0_i32 : i32, i32
  }
}

</mosaic_0001>

<bundles_post_ra>
// kernel: tpu_custom_call.1
= control target key start
LH: loop header
LB: loop body
LE: loop exit
PB: predicated region body
PF: predicated region fallthrough
CT: control target
= control target key end

     0   :  { %10 = vsyncpa [#allocation3], 0  ;;  %s527_s0 = inlined_call_operand.hbm [shape: f32[8,6], index: 0, kind: input, shape index: {}]   ;;  %s528_s1 = inlined_call_operand.hbm [shape: f32[6,64], index: 1, kind: input, shape index: {}]   ;;  %s529_s2 = inlined_call_operand.vmem [shape: f32[32,32], index: 2, kind: input, shape index: {}]   ;;  %s530_s3 = inlined_call_operand.vmem [shape: f32[32,2], index: 3, kind: input, shape index: {}]   ;;  %s531_s4 = inlined_call_operand.vmem [shape: f32[1,98], index: 4, kind: input, shape index: {}]   ;;  %s532_s5 = inlined_call_operand.vmem [shape: f32[8,2], index: 5, kind: output, shape index: {}]  }
   0x1   :  { %11 = vsyncpa [#allocation5], 0  ;;  %s452_s18 = smov [#allocation2]   ;;  %s453_s20 = smov [#allocation4]  }
   0x2   :  { %s18_s19 = sshll.u32 %s452_s18, 4  ;;  %s28_s21 = sshll.u32 %s453_s20, 4  ;;  %s19_s19 = int_to_ptr.vmem [resolvable:$true] %s18_s19  ;;  %s29_s21 = int_to_ptr.vmem [resolvable:$true] %s28_s21 }
   0x3   :  { %s416_s22 = scalar_lea.vmem %s19_s19, 128  ;;  %p421_p1 = scmp.lt.s32.totalorder %s19_s19, %s19_s19 }
   0x4   :  { %p417_p0 = scmp.ne.s32.totalorder %s19_s19, %s416_s22  ;;  %p422_p2 = scmp.lt.s32.totalorder %s416_s22, %s416_s22 }
   0x6   :  { %p423_p3 = por %p422_p2, %p421_p1 }
   0x8   :  { %p424_p4 = pnand %p423_p3, %p417_p0 }
   0xa   :  { %427 = shalt.err (!%p424_p4)
}
   0xb   :  { %21 = dma.hbm_to_vmem [thread:$0]  %s527_s0, 128, %s19_s19, [#allocation3]  }
   0xc   :  { %s436_s25 = scalar_lea.vmem %s29_s21, 128  ;;  %p441_p6 = scmp.lt.s32.totalorder %s29_s21, %s29_s21 }
   0xd   :  { %p437_p5 = scmp.ne.s32.totalorder %s29_s21, %s436_s25  ;;  %p442_p7 = scmp.lt.s32.totalorder %s436_s25, %s436_s25 }
   0xf   :  { %p443_p8 = por %p442_p7, %p441_p6 }
  0x11   :  { %p444_p9 = pnand %p443_p8, %p437_p5 }
  0x13   :  { %447 = shalt.err (!%p444_p9)
}
  0x14   :  { %31 = dma.hbm_to_vmem [thread:$0]  %s528_s1, 128, %s29_s21, [#allocation5]  }
  0x15   :  { %448 = dma.done.wait [#allocation3], 128  }
  0x16   :  { %449 = vsyncadd [#allocation3], 4294967168 }
  0x17   :  { %450 = dma.done.wait [#allocation5], 128  }
  0x18   :  { %451 = vsyncadd [#allocation5], 4294967168  ;;  %v454_v0 = vmov 0.0   ;;  %vm455_vm0 = vmmov 0   ;;  %vm57_vm1 = vcmask 1045504   ;;  %vm53_vm2 = vcmask 48128  }
  0x19   :  { %360 = vmatprep.subr.mxu0 %v454_v0  ;;  %362 = vmatprep.mubr.msk.f32.mxu0 %vm455_vm0, %v454_v0  ;;  %v46_v1 = vld [vmem:[#allocation4] sm:$0x3f]  ;;  %v44_v2 = vld [vmem:[#allocation2] sm:$0xff]  ;;  %v145_v3 = vld [vmem:[%s529_s2 + $0x18] sm:$0xff]  ;;  %s456_s11 = smov 96   ;;  %s457_s12 = smov 64   ;;  %v304_v45 = vlaneseq }
  0x1a   :  { %365 = vmatprep.subr.mxu1 %v454_v0  ;;  %373 = vmatprep.mubr.msk.f32.mxu1 %vm455_vm0, %v454_v0  ;;  %v144_v4 = vld [vmem:[%s529_s2 + $0x10] sm:$0xff]  ;;  %v143_v5 = vld [vmem:[%s529_s2 + $0x8] sm:$0xff]  ;;  %v342_v6 = vld [vmem:[%s531_s4] ss:$0 sm:$0xff]  ;;  %vm149_vm3 = vcmask 261120   ;;  %s458_s19 = smov 32  }
  0x1b   :  { %361 = vmatpush3.msk.msra.mxu0 %vm57_vm1, %v46_v1  ;;  %366 = vmatpush3.msra.mxu1 %v145_v3  ;;  %v142_v13 = vld [vmem:[%s529_s2] sm:$0xff]  ;;  %v227_v17 = vld [vmem:[%s530_s3 + $0x18] sm:$0xff]  ;;  %v226_v18 = vld [vmem:[%s530_s3 + $0x10] sm:$0xff]  ;;  %v305_v46 = vand.u32 127, %v304_v45  ;;  %vm334_vm9 = vcmask 15360  }
  0x1c   :  { %363 = vmatmul.mubr.msk.f32.vlgmr.msra.gmra.mxu0 %vm53_vm2, %v44_v2  ;;  %376 = vmatprep.subr.mxu0 %v454_v0  ;;  %v225_v19 = vld [vmem:[%s530_s3 + $0x8] sm:$0xff]  ;;  %v224_v20 = vld [vmem:[%s530_s3] sm:$0xff] }
  0x1d   :  { %384 = vmatprep.mubr.msk.f32.mxu0 %vm455_vm0, %v454_v0  ;;  %367 = vmatprep.subr.mxu1 %v454_v0  ;;  %vm306_vm6 = vcmp.lt.s32.totalorder %v305_v46, 1 }
  0x1e   :  { %368 = vmatpush3.msra.mxu1 %v144_v4  ;;  %377 = vmatpush3.msra.mxu0 %v227_v17 }
  0x1f   :  { %369 = vmatprep.subr.mxu1 %v454_v0  ;;  %378 = vmatprep.subr.mxu0 %v454_v0 }
  0x20   :  { %370 = vmatpush3.msra.mxu1 %v143_v5  ;;  %379 = vmatpush3.msra.mxu0 %v226_v18 }
  0x21   :  { %371 = vmatprep.subr.mxu1 %v454_v0  ;;  %380 = vmatprep.subr.mxu0 %v454_v0 }
  0x22   :  { %372 = vmatpush3.msra.mxu1 %v142_v13  ;;  %381 = vmatpush3.msra.mxu0 %v225_v19 }
  0x23   :  { %382 = vmatprep.subr.mxu0 %v454_v0  ;;  %228 = vrot.lane.b32.xlu1 %v342_v6, %s458_s19 }
  0x24   :  { %383 = vmatpush3.msra.mxu0 %v224_v20 }
  0x95   :  { %v229_v26 = vpop.permute.xlu1 %228 }
  0xdc   :  { %v127_v7 = vpop.f32.mrf.mxu0 }
  0xdd   :  { %v128_v8 = vadd.f32 %v342_v6, %v127_v7 }
  0xde   :  { %v364_v9 = vpop.f32.mrf.mxu0 }
  0xdf   :  { %v345_v10 = vmul.f32 -1.442695, %v128_v8 }
  0xe1   :  { %394 = vpow2.f32 %v345_v10 }
  0xee   :  { %v395_v11 = vpop.eup %394 }
  0xef   :  { %v134_v12 = vadd.f32 1.0, %v395_v11 }
  0xf1   :  { %396 = vrcp.f32 %v134_v12 }
  0xfe   :  { %v397_v14 = vpop.eup %396 }
  0xff   :  { %138 = vrot.lane.b32.xlu0 %v397_v14, %s456_s11 }
 0x103   :  { %146 = vrot.lane.b32.xlu0 %v342_v6, %s457_s12 }
 0x171   :  { %v139_v15 = vpop.permute.xlu0 %138 }
 0x172   :  { %v141_v16 = vmul.f32 %v397_v14, %v139_v15 }
 0x174   :  { %374 = vmatmul.mubr.msk.f32.vlgmr.msra.gmra.mxu1 %vm149_vm3, %v141_v16 }
 0x175   :  { %v147_v21 = vpop.permute.xlu0 %146 }
 0x234   :  { %v219_v22 = vpop.f32.mrf.mxu1 }
 0x235   :  { %v220_v23 = vadd.f32 %v219_v22, %v147_v21 }
 0x236   :  { %v375_v24 = vpop.f32.mrf.mxu1 }
 0x237   :  { %398 = vtanh.f32 %v220_v23 }
 0x244   :  { %v399_v25 = vpop.eup %398 }
 0x245   :  { %385 = vmatmul.mubr.msk.f32.vlgmr.msra.gmra.mxu0 %vm149_vm3, %v399_v25 }
 0x305   :  { %v300_v27 = vpop.f32.mrf.mxu0 }
 0x306   :  { %v301_v28 = vadd.f32 %v300_v27, %v229_v26 }
 0x307   :  { %v386_v29 = vpop.f32.mrf.mxu0 }
 0x308   :  { %v311_v30 = vand.u32 2147483647, %v301_v28  ;;  %v308_v41 = vmax.f32 %v301_v28, 0.0  ;;  %vm309_vm5 = vcmp.ne.f32.partialorder %v301_v28, %v301_v28 }
 0x30a   :  { %v312_v31 = vsub.f32 0.0, %v311_v30 }
 0x30c   :  { %v313_v32 = vmul.f32 1.442695, %v312_v31 }
 0x30e   :  { %400 = vpow2.f32 %v313_v32 }
 0x31b   :  { %v401_v33 = vpop.eup %400 }
 0x31c   :  { %v315_v34 = vadd.f32 1.0, %v401_v33  ;;  %v318_v35 = vmul.f32 -0.5, %v401_v33  ;;  %v321_v37 = vand.u32 2147483647, %v401_v33 }
 0x31e   :  { %402 = vlog2.f32 %v315_v34  ;;  %v319_v36 = vadd.f32 1.0, %v318_v35  ;;  %vm322_vm4 = vcmp.lt.f32.partialorder %v321_v37, 0.0004427343 }
 0x320   :  { %v320_v40 = vmul.f32 %v401_v33, %v319_v36 }
 0x32b   :  { %v403_v38 = vpop.eup %402 }
 0x32c   :  { %v317_v39 = vmul.f32 0.6931472, %v403_v38 }
 0x32e   :  { %v323_v42 = vsel %vm322_vm4, %v320_v40, %v317_v39 }
 0x32f   :  { %v324_v43 = vadd.f32 %v323_v42, %v308_v41 }
 0x331   :  { %v325_v44 = vsel %vm309_vm5, %v301_v28, %v324_v43 }
 0x332   :  { %404 = vrsqrt.f32 %v325_v44  ;;  %vm328_vm7 = vcmp.eq.f32.partialorder %v325_v44, inf  ;;  %v331_v49 = vand.u32 2147483648, %v325_v44  ;;  %vm330_vm8 = vcmp.eq.f32.partialorder %v325_v44, 0.0 }
 0x333   :  { %406 = vtanh.f32 %v301_v28 }
 0x33f   :  { %v405_v47 = vpop.eup %404 }
 0x340   :  { %v327_v48 = vmul.f32 %v405_v47, %v325_v44  ;;  %v407_v51 = vpop.eup %406 }
 0x342   :  { %v329_v50 = vsel %vm328_vm7, %v325_v44, %v327_v48 }
 0x343   :  { %v332_v52 = vsel %vm330_vm8, %v331_v49, %v329_v50 }
 0x344   :  { %v333_v53 = vsel %vm306_vm6, %v407_v51, %v332_v52 }
 0x345   :  { %335 = vst.msk [vmem:[%s532_s5] sm:$0xff] %vm334_vm9, %v333_v53 }
 0x346   :  { %340 = vsyncpa [#allocation3], 1 }
 0x347   :  { %341 = vsyncpa [#allocation5], 1 }

</bundles_post_ra>
